<compile_context>
chip_gen: v7x
topology: tpu7x:2x2x1
jax: 0.10.0
libtpu: 0.0.40
codegen_flags: <defaults>
</compile_context>

<pallas_src>
import numpy as np
import jax
import jax.numpy as jnp
from jax import lax
from jax.experimental import pallas as pl
from jax.experimental.pallas import tpu as pltpu

EPSILON = 1e-16

# ---- hyperparameters (the PyTorch module reads these from a global `hp`) ----
SR = 16000
N_FFT = 128
HOP_LENGTH = 32
WIN_LENGTH = 128
N_MELS = 32
FMIN = 0.0
FMAX = SR / 2.0
PREEMPHASIS = 0.97
N_FREQS = N_FFT // 2 + 1          # onesided STFT bins = 65

F_PAD = 128                       # freq bins zero-padded to a full 128-lane group
N_SHIFTS = N_FFT // HOP_LENGTH    # 4 hop-rows per frame
MAX_FRAME_TILE = 512              # frames per grid block (multiple of 128)
# Set to jnp.bfloat16 on v6e/v7x for ~30% less HBM traffic (re-validate dB error).
COMPUTE_DTYPE = jnp.float32

assert N_FFT % HOP_LENGTH == 0 and N_FREQS <= F_PAD and MAX_FRAME_TILE % 128 == 0


# ----------------------------- parameter setup ------------------------------
def _hz_to_mel(f):
    return 2595.0 * np.log10(1.0 + np.asarray(f, dtype=np.float64) / 700.0)


def _mel_to_hz(m):
    return 700.0 * (10.0 ** (np.asarray(m, dtype=np.float64) / 2595.0) - 1.0)


def mel_filterbank(sr, n_fft, n_mels, fmin, fmax):
    """Deterministic triangular mel filterbank [n_mels, n_fft//2+1].
    Stand-in for librosa.filters.mel (synthetic, no file/library access)."""
    n_freqs = n_fft // 2 + 1
    fft_freqs = np.linspace(0.0, sr / 2.0, n_freqs)
    mel_pts = np.linspace(_hz_to_mel(fmin), _hz_to_mel(fmax), n_mels + 2)
    hz_pts = _mel_to_hz(mel_pts)
    fb = np.zeros((n_mels, n_freqs), dtype=np.float64)
    for m in range(n_mels):
        lo, c, hi = hz_pts[m], hz_pts[m + 1], hz_pts[m + 2]
        up = (fft_freqs - lo) / max(c - lo, 1e-8)
        down = (hi - fft_freqs) / max(hi - c, 1e-8)
        fb[m] = np.maximum(0.0, np.minimum(up, down))
    enorm = 2.0 / (hz_pts[2:n_mels + 2] - hz_pts[:n_mels])   # slaney area-norm
    fb *= enorm[:, None]
    return fb.astype(np.float32)


def padded_mel_filterbank(sr, n_fft, n_mels, fmin, fmax, f_pad):
    """[n_mels, f_pad] with zero columns beyond the real 65 freq bins."""
    fb = mel_filterbank(sr, n_fft, n_mels, fmin, fmax)
    out = np.zeros((n_mels, f_pad), dtype=np.float32)
    out[:, : fb.shape[1]] = fb
    return out


def fused_windowed_dft(n_fft, win_length, f_pad):
    """Single fused DFT weight [n_fft, 2*f_pad] = [cos | sin] with the periodic
    Hann window folded in; each half zero-padded from 65 to 128 freq columns so
    both halves are full lane groups (padding contributes exact zeros)."""
    n = np.arange(n_fft)
    window = 0.5 - 0.5 * np.cos(2.0 * np.pi * n / win_length)  # torch.hann_window (periodic)
    f = np.arange(n_fft // 2 + 1)
    ang = 2.0 * np.pi * np.outer(n, f) / n_fft                 # [n_fft, 65]
    cw = window[:, None] * np.cos(ang)
    sw = -window[:, None] * np.sin(ang)
    out = np.zeros((n_fft, 2 * f_pad), dtype=np.float32)
    out[:, : cw.shape[1]] = cw
    out[:, f_pad: f_pad + sw.shape[1]] = sw
    return out


# TODO(synk): `_inverse_mel` / `mel_to_linear_matrix` are parameters of the
# module but are never used in forward(); they are intentionally not built.


# --------------------------------- kernel -----------------------------------
def mel_spec_kernel(sig_ref, cwsw_ref, melb_ref, out_ref):
    # sig_ref : [TF+8, 32]   hop-major rows of the padded signal (row r = 32 samples)
    # cwsw_ref: [128, 256]   fused Hann-windowed [cos | sin] DFT, freq-padded to 128
    # melb_ref: [32, 128]    mel filterbank, freq-padded to 128
    # out_ref : [32, TF]     dB mel, frames on the lane axis (PyTorch layout)
    tf = out_ref.shape[-1]

    # STFT as matmul without materializing the 4x-redundant frame matrix:
    #   frames[t] = concat_j sig[t+j]  =>  Y = sum_j sig[j:j+TF] @ cwsw[32j:32j+32]
    y = jnp.dot(sig_ref[pl.ds(0, tf), :],
                cwsw_ref[pl.ds(0, HOP_LENGTH), :],
                preferred_element_type=jnp.float32)                 # [TF, 256]
    for j in range(1, N_SHIFTS):                                    # static unroll (4)
        y = y + jnp.dot(sig_ref[pl.ds(j, tf), :],
                        cwsw_ref[pl.ds(j * HOP_LENGTH, HOP_LENGTH), :],
                        preferred_element_type=jnp.float32)

    re = y[:, :F_PAD]                                               # aligned lane slices
    im = y[:, F_PAD:]
    power = re * re + im * im                                       # [TF, 128], f32

    # mel^T = melb @ power^T  -> output directly in [n_mels, frames] layout,
    # so frames (a multiple of 128) is the lane axis: unmasked stores, and the
    # wrapper never has to transpose / round-trip a padded mel slab through HBM.
    mel_t = lax.dot_general(
        melb_ref[...], power.astype(melb_ref.dtype),
        dimension_numbers=(((1,), (1,)), ((), ())),
        preferred_element_type=jnp.float32)                         # [32, TF]
    mel_t = jnp.maximum(mel_t, EPSILON)                             # torch.clamp(mel, EPSILON)
    out_ref[...] = (10.0 * jnp.log10(mel_t)).astype(out_ref.dtype)


# -------------------------------- wrapper ------------------------------------
def preprocessor_forward(wav):
    """wav: [b, T] int16  ->  [b, n_mels, n_frames] float32 (dB-scaled mel)."""
    b, T = wav.shape
    x = wav.astype(jnp.float32)

    # TODO(synk): preemphasis + cast could also be fused into the kernel with one
    # sample of left context; kept as one cheap elementwise XLA pass here.
    pre = x[:, 1:] - PREEMPHASIS * x[:, :-1]                    # [b, L]
    L = T - 1

    # torch.stft(center=True): reflect-pad by n_fft//2
    pad = N_FFT // 2
    padded = jnp.pad(pre, ((0, 0), (pad, pad)), mode="reflect")  # [b, L + n_fft]
    n_frames = 1 + L // HOP_LENGTH

    # Frames tile: multiple of 128 so the output lane axis is dense/unmasked.
    TF = int(min(128 * pl.cdiv(n_frames, 128), MAX_FRAME_TILE))
    n_blocks = int(pl.cdiv(n_frames, TF))
    n_frames_pad = n_blocks * TF

    # Hop-major rows: row r = padded[32r : 32r+32]; frame t = rows t..t+3.
    rows_total = n_frames_pad + 8
    need = rows_total * HOP_LENGTH
    padded = jnp.pad(padded, ((0, 0), (0, need - padded.shape[1])))
    sig2d = padded.reshape(b, rows_total, HOP_LENGTH)

    # Per-block overlapping row windows: only 8/TF (~1.5%) duplication instead of
    # the 4x blow-up of a fully framed tensor.
    row_idx = jnp.arange(n_blocks)[:, None] * TF + jnp.arange(TF + 8)[None, :]
    sig_blocks = sig2d[:, row_idx, :].astype(COMPUTE_DTYPE)      # [b, n_blocks, TF+8, 32]

    cwsw = jnp.asarray(fused_windowed_dft(N_FFT, WIN_LENGTH, F_PAD)).astype(COMPUTE_DTYPE)
    melb = jnp.asarray(
        padded_mel_filterbank(SR, N_FFT, N_MELS, FMIN, FMAX, F_PAD)).astype(COMPUTE_DTYPE)

    out = pl.pallas_call(
        mel_spec_kernel,
        out_shape=jax.ShapeDtypeStruct((b, N_MELS, n_frames_pad), jnp.float32),
        grid_spec=pltpu.PrefetchScalarGridSpec(
            num_scalar_prefetch=0,
            grid=(b, n_blocks),
            in_specs=[
                pl.BlockSpec((None, None, TF + 8, HOP_LENGTH),
                             lambda bi, fi: (bi, fi, 0, 0)),
                pl.BlockSpec((N_FFT, 2 * F_PAD), lambda bi, fi: (0, 0)),   # resident
                pl.BlockSpec((N_MELS, F_PAD), lambda bi, fi: (0, 0)),      # resident
            ],
            out_specs=pl.BlockSpec((None, N_MELS, TF), lambda bi, fi: (bi, 0, fi)),
        ),
        compiler_params=pltpu.CompilerParams(
            dimension_semantics=("parallel", "parallel")),
    )(sig_blocks, cwsw, melb)

    # Already in PyTorch layout [b, n_mels, frames]; just drop padded frames.
    return out[:, :, :n_frames]


# pure-JAX reference (same math, no Pallas) for a sanity check
def _reference_forward(wav):
    b, T = wav.shape
    x = wav.astype(jnp.float32)
    pre = x[:, 1:] - PREEMPHASIS * x[:, :-1]
    L = T - 1
    pad = N_FFT // 2
    padded = jnp.pad(pre, ((0, 0), (pad, pad)), mode="reflect")
    n_frames = 1 + L // HOP_LENGTH
    idx = jnp.arange(n_frames)[:, None] * HOP_LENGTH + jnp.arange(N_FFT)[None, :]
    frames = padded[:, idx]                                       # [b, n_frames, n_fft]
    n = np.arange(N_FFT)
    window = 0.5 - 0.5 * np.cos(2.0 * np.pi * n / WIN_LENGTH)
    f = np.arange(N_FREQS)
    ang = 2.0 * np.pi * np.outer(n, f) / N_FFT
    cw = jnp.asarray((window[:, None] * np.cos(ang)).astype(np.float32))
    sw = jnp.asarray((-window[:, None] * np.sin(ang)).astype(np.float32))
    re = frames @ cw
    im = frames @ sw
    power = re * re + im * im
    melb = jnp.asarray(mel_filterbank(SR, N_FFT, N_MELS, FMIN, FMAX).T)
    mel = power @ melb
    mel = 10.0 * jnp.log10(jnp.maximum(mel, EPSILON))
    return jnp.transpose(mel, (0, 2, 1))


if __name__ == "__main__":
    key = jax.random.PRNGKey(0)
    b, T = 2, 512
    wav = jax.random.randint(key, (b, T), -32768, 32767, dtype=jnp.int32).astype(jnp.int16)

    out = jax.block_until_ready(preprocessor_forward(wav))
    n_frames = 1 + (T - 1) // HOP_LENGTH
    assert out.shape == (b, N_MELS, n_frames), out.shape
    assert out.dtype == jnp.float32

    ref = jax.block_until_ready(_reference_forward(wav))
    max_diff = float(jnp.max(jnp.abs(out - ref)))
    assert np.isfinite(max_diff) and max_diff < 1.0, f"max diff {max_diff}"

    print("KERNEL_OK")
</pallas_src>

<mosaic_0001>
module attributes {stable_mosaic.version = 11 : i64} {
  func.func @mel_spec_kernel(%arg0: i32, %arg1: i32, %arg2: memref<1x1x136x32xf32, #tpu.memory_space<vmem>>, %arg3: memref<128x256xf32, #tpu.memory_space<vmem>>, %arg4: memref<32x128xf32, #tpu.memory_space<vmem>>, %arg5: memref<1x32x128xf32, #tpu.memory_space<vmem>>) attributes {dimension_semantics = [#tpu.dimension_semantics<parallel>, #tpu.dimension_semantics<parallel>], iteration_bounds = array<i64: 2, 1>, scalar_prefetch = 0 : i64, scratch_operands = 0 : i64, tpu.core_type = #tpu.core_type<tc>, window_params = [{transform_indices = @transform_0, window_bounds = array<i64: 1, 1, 136, 32>}, {pipeline_mode = #tpu.pipeline_mode<synchronous>, transform_indices = @transform_1, window_bounds = array<i64: 128, 256>}, {pipeline_mode = #tpu.pipeline_mode<synchronous>, transform_indices = @transform_2, window_bounds = array<i64: 32, 128>}, {transform_indices = @transform_3, window_bounds = array<i64: 1, 32, 128>}]} {
    %c0 = arith.constant 0 : index
    %c0_0 = arith.constant 0 : index
    %c0_1 = arith.constant 0 : index
    %c0_2 = arith.constant 0 : index
    %0 = vector.load %arg2[%c0, %c0_0, %c0_1, %c0_2] : memref<1x1x136x32xf32, #tpu.memory_space<vmem>>, vector<1x1x128x32xf32>
    %1 = vector.shape_cast %0 : vector<1x1x128x32xf32> to vector<128x32xf32>
    %c0_3 = arith.constant 0 : index
    %c0_4 = arith.constant 0 : index
    %2 = vector.load %arg3[%c0_3, %c0_4] : memref<128x256xf32, #tpu.memory_space<vmem>>, vector<32x256xf32>
    %cst = arith.constant dense<0.000000e+00> : vector<128x256xf32>
    %3 = tpu.matmul %1, %2, %cst {dimension_numbers = #tpu.dot_dimension_numbers<[1], [0], [0], [1], [0, 0, 1, 1], [], []>} : vector<128x32xf32>, vector<32x256xf32>, vector<128x256xf32> -> vector<128x256xf32>
    %c0_5 = arith.constant 0 : index
    %c0_6 = arith.constant 0 : index
    %c1 = arith.constant 1 : index
    %c0_7 = arith.constant 0 : index
    %4 = vector.load %arg2[%c0_5, %c0_6, %c1, %c0_7] : memref<1x1x136x32xf32, #tpu.memory_space<vmem>>, vector<1x1x128x32xf32>
    %5 = vector.shape_cast %4 : vector<1x1x128x32xf32> to vector<128x32xf32>
    %c32 = arith.constant 32 : index
    %c0_8 = arith.constant 0 : index
    %6 = vector.load %arg3[%c32, %c0_8] : memref<128x256xf32, #tpu.memory_space<vmem>>, vector<32x256xf32>
    %cst_9 = arith.constant dense<0.000000e+00> : vector<128x256xf32>
    %7 = tpu.matmul %5, %6, %cst_9 {dimension_numbers = #tpu.dot_dimension_numbers<[1], [0], [0], [1], [0, 0, 1, 1], [], []>} : vector<128x32xf32>, vector<32x256xf32>, vector<128x256xf32> -> vector<128x256xf32>
    %8 = arith.addf %3, %7 : vector<128x256xf32>
    %c0_10 = arith.constant 0 : index
    %c0_11 = arith.constant 0 : index
    %c2 = arith.constant 2 : index
    %c0_12 = arith.constant 0 : index
    %9 = vector.load %arg2[%c0_10, %c0_11, %c2, %c0_12] : memref<1x1x136x32xf32, #tpu.memory_space<vmem>>, vector<1x1x128x32xf32>
    %10 = vector.shape_cast %9 : vector<1x1x128x32xf32> to vector<128x32xf32>
    %c64 = arith.constant 64 : index
    %c0_13 = arith.constant 0 : index
    %11 = vector.load %arg3[%c64, %c0_13] : memref<128x256xf32, #tpu.memory_space<vmem>>, vector<32x256xf32>
    %cst_14 = arith.constant dense<0.000000e+00> : vector<128x256xf32>
    %12 = tpu.matmul %10, %11, %cst_14 {dimension_numbers = #tpu.dot_dimension_numbers<[1], [0], [0], [1], [0, 0, 1, 1], [], []>} : vector<128x32xf32>, vector<32x256xf32>, vector<128x256xf32> -> vector<128x256xf32>
    %13 = arith.addf %8, %12 : vector<128x256xf32>
    %c0_15 = arith.constant 0 : index
    %c0_16 = arith.constant 0 : index
    %c3 = arith.constant 3 : index
    %c0_17 = arith.constant 0 : index
    %14 = vector.load %arg2[%c0_15, %c0_16, %c3, %c0_17] : memref<1x1x136x32xf32, #tpu.memory_space<vmem>>, vector<1x1x128x32xf32>
    %15 = vector.shape_cast %14 : vector<1x1x128x32xf32> to vector<128x32xf32>
    %c96 = arith.constant 96 : index
    %c0_18 = arith.constant 0 : index
    %16 = vector.load %arg3[%c96, %c0_18] : memref<128x256xf32, #tpu.memory_space<vmem>>, vector<32x256xf32>
    %cst_19 = arith.constant dense<0.000000e+00> : vector<128x256xf32>
    %17 = tpu.matmul %15, %16, %cst_19 {dimension_numbers = #tpu.dot_dimension_numbers<[1], [0], [0], [1], [0, 0, 1, 1], [], []>} : vector<128x32xf32>, vector<32x256xf32>, vector<128x256xf32> -> vector<128x256xf32>
    %18 = arith.addf %13, %17 : vector<128x256xf32>
    %19 = vector.extract_strided_slice %18 {offsets = [0, 0], sizes = [128, 128], strides = [1, 1]} : vector<128x256xf32> to vector<128x128xf32>
    %20 = vector.extract_strided_slice %18 {offsets = [0, 128], sizes = [128, 128], strides = [1, 1]} : vector<128x256xf32> to vector<128x128xf32>
    %21 = arith.mulf %19, %19 : vector<128x128xf32>
    %22 = arith.mulf %20, %20 : vector<128x128xf32>
    %23 = arith.addf %21, %22 : vector<128x128xf32>
    %c0_20 = arith.constant 0 : index
    %c0_21 = arith.constant 0 : index
    %24 = vector.load %arg4[%c0_20, %c0_21] : memref<32x128xf32, #tpu.memory_space<vmem>>, vector<32x128xf32>
    %cst_22 = arith.constant dense<0.000000e+00> : vector<32x128xf32>
    %25 = tpu.matmul %24, %23, %cst_22 {dimension_numbers = #tpu.dot_dimension_numbers<[1], [1], [0], [0], [0, 0, 1, 0], [], []>} : vector<32x128xf32>, vector<128x128xf32>, vector<32x128xf32> -> vector<32x128xf32>
    %cst_23 = arith.constant 1.000000e-16 : f32
    %26 = vector.broadcast %cst_23 : f32 to vector<32x128xf32>
    %27 = arith.maximumf %25, %26 : vector<32x128xf32>
    %28 = math.log %27 : vector<32x128xf32>
    %cst_24 = arith.constant 0.434294492 : f32
    %29 = vector.broadcast %cst_24 : f32 to vector<32x128xf32>
    %30 = arith.mulf %28, %29 : vector<32x128xf32>
    %cst_25 = arith.constant 1.000000e+01 : f32
    %31 = vector.broadcast %cst_25 : f32 to vector<32x128xf32>
    %32 = arith.mulf %31, %30 : vector<32x128xf32>
    %c0_26 = arith.constant 0 : index
    %c0_27 = arith.constant 0 : index
    %c0_28 = arith.constant 0 : index
    %33 = vector.load %arg5[%c0_26, %c0_27, %c0_28] : memref<1x32x128xf32, #tpu.memory_space<vmem>>, vector<1x32x128xf32>
    %34 = vector.shape_cast %33 : vector<1x32x128xf32> to vector<32x128xf32>
    %35 = vector.shape_cast %32 : vector<32x128xf32> to vector<1x32x128xf32>
    tpu.vector_store %arg5[%c0_26, %c0_27, %c0_28], %35 {strides = array<i32>} : memref<1x32x128xf32, #tpu.memory_space<vmem>>, vector<1x32x128xf32>,
    return
  }
  func.func @transform_0(%arg0: i32, %arg1: i32) -> (i32, i32, i32, i32) {
    %c0_i32 = arith.constant 0 : i32
    %c0_i32_0 = arith.constant 0 : i32
    %c0_i32_1 = arith.constant 0 : i32
    return %arg0, %arg1, %c0_i32, %c0_i32_0 : i32, i32, i32, i32
  }
  func.func @transform_1(%arg0: i32, %arg1: i32) -> (i32, i32) {
    %c0_i32 = arith.constant 0 : i32
    %c0_i32_0 = arith.constant 0 : i32
    %c0_i32_1 = arith.constant 0 : i32
    return %c0_i32, %c0_i32_0 : i32, i32
  }
  func.func @transform_2(%arg0: i32, %arg1: i32) -> (i32, i32) {
    %c0_i32 = arith.constant 0 : i32
    %c0_i32_0 = arith.constant 0 : i32
    %c0_i32_1 = arith.constant 0 : i32
    return %c0_i32, %c0_i32_0 : i32, i32
  }
  func.func @transform_3(%arg0: i32, %arg1: i32) -> (i32, i32, i32) {
    %c0_i32 = arith.constant 0 : i32
    %c0_i32_0 = arith.constant 0 : i32
    return %arg0, %c0_i32, %arg1 : i32, i32, i32
  }
}

</mosaic_0001>

<bundles_post_ra>
// kernel: tpu_custom_call.1
= control target key start
LH: loop header
LB: loop body
LE: loop exit
PB: predicated region body
PF: predicated region fallthrough
CT: control target
= control target key end

     0   :  { %8 = vsyncpa [#allocation3], 0  ;;  %s2350_s0 = inlined_call_operand.vmem [shape: f32[2,1,136,32], index: 0, kind: input, shape index: {}]   ;;  %s2351_s1 = inlined_call_operand.vmem [shape: f32[128,256], index: 1, kind: input, shape index: {}]   ;;  %s2352_s2 = inlined_call_operand.vmem [shape: f32[32,128], index: 2, kind: input, shape index: {}]   ;;  %s2353_s3 = inlined_call_operand.hbm [shape: f32[2,32,128], index: 3, kind: output, shape index: {}]  }
   0x1   :  { %10 = vsyncpa [#allocation3 + $0x1], 0  ;;  %s1933_s12 = smov 0   ;;  %s1935_s13 = smov 0  }
   0x2   :  { %s1937_s14 = smov 0   ;;  %s1939_s15 = smov 0  }
   0x3   :  { %s1941_s16 = smov 0   ;;  %s1943_s17 = smov 0  }
   0x4 LB: > { %s1451_s18 = sadd.s32 4294967295, %s1907_s17   ;;  %s1452_s19 = sadd.s32 4294967294, %s1907_s17   ;;  %s1907_s17 = sphi %s1943_s17, %s16_s17   ;;  %s1903_s16 = sphi %s1941_s16, %s2360_s16   ;;  %s1899_s15 = sphi %s1939_s15, %s2359_s15   ;;  %s1895_s14 = sphi %s1937_s14, %s2358_s14   ;;  %s1891_s13 = sphi %s1935_s13, %s2357_s13   ;;  %s1887_s12 = sphi %s1933_s12, %s2356_s12  }
   0x5   : > { %s28_s20 = sadd.s32 1, %s1903_s16  ;;  %s107_s21 = sadd.s32 1, %s1895_s14 }
   0x6   : > { %p30_p0 = scmp.ge.s32.totalorder %s28_s20, 2  ;;  %p117_p1 = scmp.ne.s32.totalorder %s1895_s14, %s1891_s13 }
   0x7   : > { %p118_p2 = scmp.eq.s32.totalorder %s1451_s18, 1  ;;  %p123_p3 = scmp.ne.s32.totalorder %s1891_s13, %s1887_s12 }
   0x8   : > { %s2362_s20 = smov (%p30_p0, %s28_s20), 0  ;;  %p124_p5 = scmp.eq.s32.totalorder %s1452_s19, 1 }
   0x9   : > { %p1973_p4 = por %p118_p2, %p117_p1  ;;  %s102_s23 = ssub.s32 %s1903_s16, %s2362_s20 }
   0xa   : > { %p1455_p6 = scmp.ge.s32.totalorder %s1907_s17, 1  ;;  %p105_p7 = scmp.eq.s32.totalorder %s102_s23, 0 }
   0xb   : > { %p1980_p8 = por %p124_p5, %p123_p3  ;;  %p160_p9 = scmp.lt.s32.totalorder %s1907_s17, 3 }
   0xc   : > { %s1986_s25 = scalar_select %p105_p7, %s1895_s14, %s107_s21  }
   0xd   : > { %p161_p10 = pnand %p1455_p6, %p160_p9 }
   0xe   : > { %v238_v0 = vld [vmem:[%s2351_s1 + $0x48] sm:$0xff] (!%p161_p10)  ;;  %v240_v1 = vld [vmem:[%s2351_s1 + $0x58] sm:$0xff] (!%p161_p10)  ;;  %p188_p11 = scmp.lt.s32.totalorder (!%p161_p10), %s1899_s15, 1  ;;  %v237_v5 = vld [vmem:[%s2351_s1 + $0x40] sm:$0xff] (!%p161_p10)  ;;  %v1909_v7 = vmov (!%p161_p10), 0.0   ;;  %vm245_vm0 = vcmask (!%p161_p10), 261120  }
   0xf   : > { %164 = sbr.rel (%p161_p10) target bundleno = 631 (0x277), region = 32  ;;  %v681_v2 = vld [vmem:[%s2351_s1 + $0x88] sm:$0xff] (!%p161_p10)  ;;  %v1586_v3 = vpack.c.bf16 (!%p161_p10), %v240_v1, %v238_v0  ;;  %v683_v4 = vld [vmem:[%s2351_s1 + $0x98] sm:$0xff] (!%p161_p10)  ;;  %v239_v6 = vld [vmem:[%s2351_s1 + $0x50] sm:$0xff] (!%p161_p10)  ;;  %358 = vmatprep.mubr.f32.mxu1 (!%p161_p10), %v1909_v7  ;;  %800 = vmatprep.mubr.f32.mxu0 (!%p161_p10), %v1909_v7  ;;  %s185_s9 = sand.u32 (!%p161_p10), 1, %s1891_s13  }
  0x10   : > { %v1602_v8 = vpack.c.bf16 (!%p161_p10), %v683_v4, %v681_v2  ;;  %v1588_v9 = vpack.c.bf16 (!%p161_p10), %v239_v6, %v237_v5  ;;  %v680_v10 = vld [vmem:[%s2351_s1 + $0x80] sm:$0xff] (!%p161_p10)  ;;  %v682_v11 = vld [vmem:[%s2351_s1 + $0x90] sm:$0xff] (!%p161_p10)  ;;  %v242_v12 = vld [vmem:[%s2351_s1 + $0x68] sm:$0xff] (!%p161_p10)  ;;  %s1456_s10 = sshll.u32 (!%p161_p10), %s185_s9, 5  ;;  %s1527_s21 = sshll.u32 (!%p161_p10), %s1899_s15, 9 }
  0x11   : > { %1587 = vmatprep.subr.bf16.mxu1 (!%p161_p10), %v1586_v3  ;;  %v1604_v13 = vpack.c.bf16 (!%p161_p10), %v682_v11, %v680_v10  ;;  %v244_v14 = vld [vmem:[%s2351_s1 + $0x78] sm:$0xff] (!%p161_p10)  ;;  %v685_v15 = vld [vmem:[%s2351_s1 + $0xa8] sm:$0xff] (!%p161_p10)  ;;  %v241_v19 = vld [vmem:[%s2351_s1 + $0x60] sm:$0xff] (!%p161_p10)  ;;  %s187_s11 = scalar_lea.vmem (!%p161_p10), [#allocation2], %s1456_s10  ;;  %s2302_s26 = scalar_lea.hbm (!%p161_p10), %s2353_s3, %s1527_s21 }
  0x12   : > { %v687_v16 = vld [vmem:[%s2351_s1 + $0xb8] sm:$0xff] (!%p161_p10)  ;;  %1603 = vmatprep.subr.bf16.mxu0 (!%p161_p10), %v1602_v8  ;;  %1589 = vmatpush1.bf16.msra.mxu1 (!%p161_p10), %v1588_v9  ;;  %v1590_v17 = vpack.c.bf16 (!%p161_p10), %v244_v14, %v242_v12  ;;  %v243_v20 = vld [vmem:[%s2351_s1 + $0x70] sm:$0xff] (!%p161_p10)  ;;  %v684_v21 = vld [vmem:[%s2351_s1 + $0xa0] sm:$0xff] (!%p161_p10)  ;;  %s1370_s18 = sshll.u32 (!%p161_p10), %s187_s11, 4  ;;  %s1910_s29 = smov (!%p161_p10), [#allocation2]   ;;  %s2297_s18 = int_to_ptr.vmem [resolvable:$true] %s1370_s18 }
  0x13   : > { %v1606_v18 = vpack.c.bf16 (!%p161_p10), %v687_v16, %v685_v15  ;;  %1605 = vmatpush1.bf16.msra.mxu0 (!%p161_p10), %v1604_v13  ;;  %v1592_v22 = vpack.c.bf16 (!%p161_p10), %v243_v20, %v241_v19  ;;  %v686_v23 = vld [vmem:[%s2351_s1 + $0xb0] sm:$0xff] (!%p161_p10)  ;;  %v214_v24 = vld [vmem:[%s2351_s1 + $0x8] sm:$0xff] (!%p161_p10)  ;;  %v216_v25 = vld [vmem:[%s2351_s1 + $0x18] sm:$0xff] (!%p161_p10)  ;;  %s1829_s28 = scalar_lea.vmem (!%p161_p10), %s2297_s18, 512  ;;  %s1833_s30 = sshll.u32 (!%p161_p10), %s1910_s29, 4  ;;  %s1834_s30 = int_to_ptr.vmem [resolvable:$false] %s1833_s30 }
  0x14   : > { %1591 = vmatprep.subr.bf16.mxu1 (!%p161_p10), %v1590_v17  ;;  %v1608_v26 = vpack.c.bf16 (!%p161_p10), %v686_v23, %v684_v21  ;;  %v1594_v27 = vpack.c.bf16 (!%p161_p10), %v216_v25, %v214_v24  ;;  %v946_v28 = vld [vmem:[%s2351_s1 + $0xc8] sm:$0xff] (!%p161_p10)  ;;  %v948_v29 = vld [vmem:[%s2351_s1 + $0xd8] sm:$0xff] (!%p161_p10)  ;;  %v213_v30 = vld [vmem:[%s2351_s1] sm:$0xff] (!%p161_p10)  ;;  %p1830_p12 = scmp.ne.s32.totalorder (!%p161_p10), %s2297_s18, %s1829_s28  ;;  %s1835_s4 = scalar_lea.vmem (!%p161_p10), %s1834_s30, 1024 }
  0x15   : > { %1607 = vmatprep.subr.bf16.mxu0 (!%p161_p10), %v1606_v18  ;;  %v1610_v31 = vpack.c.bf16 (!%p161_p10), %v948_v29, %v946_v28  ;;  %v215_v32 = vld [vmem:[%s2351_s1 + $0x10] sm:$0xff] (!%p161_p10)  ;;  %v945_v35 = vld [vmem:[%s2351_s1 + $0xc0] sm:$0xff] (!%p161_p10)  ;;  %v218_v41 = vld [vmem:[%s2351_s1 + $0x28] sm:$0xff] (!%p161_p10)  ;;  %p1836_p1 = scmp.lt.s32.totalorder (!%p161_p10), %s2297_s18, %s1834_s30  ;;  %p1837_p2 = scmp.lt.s32.totalorder (!%p161_p10), %s1835_s4, %s1829_s28 }
  0x16   : > { %s189_s27 = scalar_select %p188_p11, %s1899_s15, 1  ;;  %1593 = vmatpush1.bf16.msra.mxu1 %v1592_v22  ;;  %v1596_v34 = vpack.c.bf16 %v215_v32, %v213_v30  ;;  %v947_v36 = vld [vmem:[%s2351_s1 + $0xd0] sm:$0xff]  ;;  %v220_v42 = vld [vmem:[%s2351_s1 + $0x38] sm:$0xff]  ;;  %v950_v43 = vld [vmem:[%s2351_s1 + $0xe8] sm:$0xff] }
  0x17   : > { %1609 = vmatpush1.bf16.msra.mxu0 %v1608_v26  ;;  %1595 = vmatprep.subr.bf16.mxu1 %v1594_v27  ;;  %v1612_v38 = vpack.c.bf16 %v947_v36, %v945_v35  ;;  %v1598_v44 = vpack.c.bf16 %v220_v42, %v218_v41  ;;  %v952_v45 = vld [vmem:[%s2351_s1 + $0xf8] sm:$0xff]  ;;  %v217_v46 = vld [vmem:[%s2351_s1 + $0x20] sm:$0xff]  ;;  %v219_v47 = vld [vmem:[%s2351_s1 + $0x30] sm:$0xff]  ;;  %s2304_s15 = scalar_lea.sflag [#allocation3], %s185_s9  ;;  %p1831_p13 = pnand %p1830_p12, %p1973_p4 }
  0x18   : > { %s1762_s19 = smul.u32 136, %s189_s27  ;;  %1611 = vmatprep.subr.bf16.mxu0 %v1610_v31  ;;  %v1614_v49 = vpack.c.bf16 %v952_v45, %v950_v43  ;;  %v1600_v50 = vpack.c.bf16 %v219_v47, %v217_v46  ;;  %v949_v51 = vld [vmem:[%s2351_s1 + $0xe0] sm:$0xff]  ;;  %v951_v52 = vld [vmem:[%s2351_s1 + $0xf0] sm:$0xff]  ;;  %p1838_p3 = por %p1837_p2, %p1836_p1 }
  0x19   : > { %v1616_v54 = vpack.c.bf16 %v951_v52, %v949_v51  ;;  %v1244_v51 = vld [vmem:[%s2352_s2 + $0x10] sm:$0xff]  ;;  %p1832_p0 = pneg %p1831_p13 }
  0x1a   : > { %s2049_s27 = scalar_lea.vmem %s2350_s0, %s1762_s19 }
  0x1b   : > { %v221_v33 = vld [vmem:[%s2049_s27 + $0x1] sm:$0xff]  ;;  %v222_v39 = vld [vmem:[%s2049_s27 + $0x9] sm:$0xff]  ;;  %v223_v48 = vld [vmem:[%s2049_s27 + $0x11] sm:$0xff]  ;;  %p1839_p5 = pnand %p1838_p3, %p1832_p0 }
  0x1c   : > { %v664_v37 = vld [vmem:[%s2049_s27 + $0x2] sm:$0xff]  ;;  %1458 = vmatmul.mubr.msk.f32.vlgmr.msra.gmra.mrb[0].mxu1 %vm245_vm0, %v221_v33  ;;  %v665_v40 = vld [vmem:[%s2049_s27 + $0xa] sm:$0xff]  ;;  %v666_v53 = vld [vmem:[%s2049_s27 + $0x12] sm:$0xff] }
  0x1d   : > { %1490 = vmatmul.mubr.msk.f32.vlgmr.msra.gmra.mrb[0].mxu0 %vm245_vm0, %v664_v37  ;;  %1597 = vmatpush1.bf16.msra.mxu1 %v1596_v34  ;;  %v224_v55 = vld [vmem:[%s2049_s27 + $0x19] sm:$0xff]  ;;  %v225_v57 = vld [vmem:[%s2049_s27 + $0x21] sm:$0xff]  ;;  %v226_v59 = vld [vmem:[%s2049_s27 + $0x29] sm:$0xff] }
  0x1e   : > { %1613 = vmatpush1.bf16.msra.mxu0 %v1612_v38  ;;  %364 = vmatprep.mubr.f32.mxu1 %v1909_v7  ;;  %v667_v56 = vld [vmem:[%s2049_s27 + $0x1a] sm:$0xff]  ;;  %v668_v58 = vld [vmem:[%s2049_s27 + $0x22] sm:$0xff]  ;;  %v669_v60 = vld [vmem:[%s2049_s27 + $0x2a] sm:$0xff] }
  0x1f   : > { %806 = vmatprep.mubr.f32.mxu0 %v1909_v7  ;;  %1599 = vmatprep.subr.bf16.mxu1 %v1598_v44  ;;  %v227_v61 = vld [vmem:[%s2049_s27 + $0x31] sm:$0xff]  ;;  %v228_v63 = vld [vmem:[%s2049_s27 + $0x39] sm:$0xff]  ;;  %v229_v1 = vld [vmem:[%s2049_s27 + $0x41] sm:$0xff] }
  0x20   : > { %1459 = vmatmul.mubr.msk.f32.gmra.mrb[2].mxu1 %vm245_vm0, %v222_v39  ;;  %1615 = vmatprep.subr.bf16.mxu0 %v1614_v49  ;;  %v670_v62 = vld [vmem:[%s2049_s27 + $0x32] sm:$0xff]  ;;  %v671_v0 = vld [vmem:[%s2049_s27 + $0x3a] sm:$0xff]  ;;  %v672_v2 = vld [vmem:[%s2049_s27 + $0x42] sm:$0xff] }
  0x21   : > { %1491 = vmatmul.mubr.msk.f32.gmra.mrb[2].mxu0 %vm245_vm0, %v665_v40  ;;  %370 = vmatprep.mubr.f32.mxu1 %v1909_v7  ;;  %v230_v3 = vld [vmem:[%s2049_s27 + $0x49] sm:$0xff]  ;;  %v231_v5 = vld [vmem:[%s2049_s27 + $0x51] sm:$0xff]  ;;  %v232_v8 = vld [vmem:[%s2049_s27 + $0x59] sm:$0xff] }
  0x22   : > { %812 = vmatprep.mubr.f32.mxu0 %v1909_v7  ;;  %1601 = vmatpush1.bf16.msra.mxu1 %v1600_v50  ;;  %v673_v4 = vld [vmem:[%s2049_s27 + $0x4a] sm:$0xff]  ;;  %v674_v6 = vld [vmem:[%s2049_s27 + $0x52] sm:$0xff]  ;;  %v675_v9 = vld [vmem:[%s2049_s27 + $0x5a] sm:$0xff] }
  0x23   : > { %1617 = vmatpush1.bf16.msra.mxu0 %v1616_v54  ;;  %v233_v10 = vld [vmem:[%s2049_s27 + $0x61] sm:$0xff]  ;;  %v234_v12 = vld [vmem:[%s2049_s27 + $0x69] sm:$0xff]  ;;  %v235_v14 = vld [vmem:[%s2049_s27 + $0x71] sm:$0xff] }
  0x24   : > { %1460 = vmatmul.mubr.msk.f32.gmra.mrb[4].mxu1 %vm245_vm0, %v223_v48  ;;  %v676_v11 = vld [vmem:[%s2049_s27 + $0x62] sm:$0xff]  ;;  %v677_v13 = vld [vmem:[%s2049_s27 + $0x6a] sm:$0xff]  ;;  %v678_v15 = vld [vmem:[%s2049_s27 + $0x72] sm:$0xff] }
  0x25   : > { %1492 = vmatmul.mubr.msk.f32.gmra.mrb[4].mxu0 %vm245_vm0, %v666_v53  ;;  %376 = vmatprep.mubr.f32.mxu1 %v1909_v7  ;;  %v236_v16 = vld [vmem:[%s2049_s27 + $0x79] sm:$0xff]  ;;  %v929_v19 = vld [vmem:[%s2049_s27 + $0x3] sm:$0xff]  ;;  %v930_v21 = vld [vmem:[%s2049_s27 + $0xb] sm:$0xff] }
  0x26   : > { %818 = vmatprep.mubr.f32.mxu0 %v1909_v7  ;;  %v679_v17 = vld [vmem:[%s2049_s27 + $0x7a] sm:$0xff]  ;;  %v198_v20 = vld [vmem:[%s2049_s27 + $0x8] sm:$0xff]  ;;  %v199_v22 = vld [vmem:[%s2049_s27 + $0x10] sm:$0xff] }
  0x27   : > { %v197_v18 = vld [vmem:[%s2049_s27] sm:$0xff]  ;;  %v931_v23 = vld [vmem:[%s2049_s27 + $0x13] sm:$0xff]  ;;  %v202_v28 = vld [vmem:[%s2049_s27 + $0x28] sm:$0xff] }
  0x28   : > { %1461 = vmatmul.mubr.msk.f32.gmra.mrb[6].mxu1 %vm245_vm0, %v224_v55  ;;  %v200_v24 = vld [vmem:[%s2049_s27 + $0x18] sm:$0xff]  ;;  %v201_v26 = vld [vmem:[%s2049_s27 + $0x20] sm:$0xff]  ;;  %v934_v29 = vld [vmem:[%s2049_s27 + $0x2b] sm:$0xff] }
  0x29   : > { %1493 = vmatmul.mubr.msk.f32.gmra.mrb[6].mxu0 %vm245_vm0, %v667_v56  ;;  %382 = vmatprep.mubr.f32.mxu1 %v1909_v7  ;;  %v932_v25 = vld [vmem:[%s2049_s27 + $0x1b] sm:$0xff]  ;;  %v933_v27 = vld [vmem:[%s2049_s27 + $0x23] sm:$0xff]  ;;  %v203_v30 = vld [vmem:[%s2049_s27 + $0x30] sm:$0xff] }
  0x2a   : > { %824 = vmatprep.mubr.f32.mxu0 %v1909_v7  ;;  %v935_v31 = vld [vmem:[%s2049_s27 + $0x33] sm:$0xff]  ;;  %v936_v33 = vld [vmem:[%s2049_s27 + $0x3b] sm:$0xff]  ;;  %v937_v35 = vld [vmem:[%s2049_s27 + $0x43] sm:$0xff] }
  0x2b   : > { %v204_v32 = vld [vmem:[%s2049_s27 + $0x38] sm:$0xff]  ;;  %v205_v34 = vld [vmem:[%s2049_s27 + $0x40] sm:$0xff]  ;;  %v206_v36 = vld [vmem:[%s2049_s27 + $0x48] sm:$0xff] }
  0x2c   : > { %1462 = vmatmul.mubr.msk.f32.gmra.mrb[8].mxu1 %vm245_vm0, %v225_v57  ;;  %v938_v37 = vld [vmem:[%s2049_s27 + $0x4b] sm:$0xff]  ;;  %v939_v39 = vld [vmem:[%s2049_s27 + $0x53] sm:$0xff]  ;;  %v940_v41 = vld [vmem:[%s2049_s27 + $0x5b] sm:$0xff] }
  0x2d   : > { %1494 = vmatmul.mubr.msk.f32.gmra.mrb[8].mxu0 %vm245_vm0, %v668_v58  ;;  %388 = vmatprep.mubr.f32.mxu1 %v1909_v7  ;;  %v207_v38 = vld [vmem:[%s2049_s27 + $0x50] sm:$0xff]  ;;  %v208_v40 = vld [vmem:[%s2049_s27 + $0x58] sm:$0xff]  ;;  %v209_v42 = vld [vmem:[%s2049_s27 + $0x60] sm:$0xff] }
  0x2e   : > { %830 = vmatprep.mubr.f32.mxu0 %v1909_v7  ;;  %v941_v43 = vld [vmem:[%s2049_s27 + $0x63] sm:$0xff]  ;;  %v942_v45 = vld [vmem:[%s2049_s27 + $0x6b] sm:$0xff]  ;;  %v943_v47 = vld [vmem:[%s2049_s27 + $0x73] sm:$0xff] }
  0x2f   : > { %v210_v44 = vld [vmem:[%s2049_s27 + $0x68] sm:$0xff]  ;;  %v211_v46 = vld [vmem:[%s2049_s27 + $0x70] sm:$0xff]  ;;  %v212_v48 = vld [vmem:[%s2049_s27 + $0x78] sm:$0xff] }
  0x30   : > { %1463 = vmatmul.mubr.msk.f32.gmra.mrb[10].mxu1 %vm245_vm0, %v226_v59  ;;  %v944_v49 = vld [vmem:[%s2049_s27 + $0x7b] sm:$0xff] }
  0x31   : > { %1495 = vmatmul.mubr.msk.f32.gmra.mrb[10].mxu0 %vm245_vm0, %v669_v60  ;;  %394 = vmatprep.mubr.f32.mxu1 %v1909_v7  ;;  %v1242_v50 = vld [vmem:[%s2352_s2] sm:$0xff] }
  0x32   : > { %836 = vmatprep.mubr.f32.mxu0 %v1909_v7 }
  0x34   : > { %1464 = vmatmul.mubr.msk.f32.gmra.mrb[12].mxu1 %vm245_vm0, %v227_v61 }
  0x35   : > { %1496 = vmatmul.mubr.msk.f32.gmra.mrb[12].mxu0 %vm245_vm0, %v670_v62  ;;  %400 = vmatprep.mubr.f32.mxu1 %v1909_v7 }
  0x36   : > { %842 = vmatprep.mubr.f32.mxu0 %v1909_v7 }
  0x38   : > { %1465 = vmatmul.mubr.msk.f32.gmra.mrb[14].mxu1 %vm245_vm0, %v228_v63 }
  0x39   : > { %1497 = vmatmul.mubr.msk.f32.gmra.mrb[14].mxu0 %vm245_vm0, %v671_v0  ;;  %406 = vmatprep.mubr.f32.mxu1 %v1909_v7 }
  0x3a   : > { %848 = vmatprep.mubr.f32.mxu0 %v1909_v7 }
  0x3c   : > { %1466 = vmatmul.mubr.msk.f32.gmra.mrb[16].mxu1 %vm245_vm0, %v229_v1 }
  0x3d   : > { %1498 = vmatmul.mubr.msk.f32.gmra.mrb[16].mxu0 %vm245_vm0, %v672_v2  ;;  %412 = vmatprep.mubr.f32.mxu1 %v1909_v7 }
  0x3e   : > { %854 = vmatprep.mubr.f32.mxu0 %v1909_v7 }
  0x40   : > { %1467 = vmatmul.mubr.msk.f32.gmra.mrb[18].mxu1 %vm245_vm0, %v230_v3 }
  0x41   : > { %1499 = vmatmul.mubr.msk.f32.gmra.mrb[18].mxu0 %vm245_vm0, %v673_v4  ;;  %418 = vmatprep.mubr.f32.mxu1 %v1909_v7 }
  0x42   : > { %860 = vmatprep.mubr.f32.mxu0 %v1909_v7 }
  0x44   : > { %1468 = vmatmul.mubr.msk.f32.gmra.mrb[20].mxu1 %vm245_vm0, %v231_v5 }
  0x45   : > { %1500 = vmatmul.mubr.msk.f32.gmra.mrb[20].mxu0 %vm245_vm0, %v674_v6  ;;  %424 = vmatprep.mubr.f32.mxu1 %v1909_v7 }
  0x46   : > { %866 = vmatprep.mubr.f32.mxu0 %v1909_v7 }
  0x48   : > { %1469 = vmatmul.mubr.msk.f32.gmra.mrb[22].mxu1 %vm245_vm0, %v232_v8 }
  0x49   : > { %1501 = vmatmul.mubr.msk.f32.gmra.mrb[22].mxu0 %vm245_vm0, %v675_v9  ;;  %430 = vmatprep.mubr.f32.mxu1 %v1909_v7 }
  0x4a   : > { %872 = vmatprep.mubr.f32.mxu0 %v1909_v7 }
  0x4c   : > { %1470 = vmatmul.mubr.msk.f32.gmra.mrb[24].mxu1 %vm245_vm0, %v233_v10 }
  0x4d   : > { %1502 = vmatmul.mubr.msk.f32.gmra.mrb[24].mxu0 %vm245_vm0, %v676_v11  ;;  %436 = vmatprep.mubr.f32.mxu1 %v1909_v7 }
  0x4e   : > { %878 = vmatprep.mubr.f32.mxu0 %v1909_v7 }
  0x50   : > { %1471 = vmatmul.mubr.msk.f32.gmra.mrb[26].mxu1 %vm245_vm0, %v234_v12 }
  0x51   : > { %1503 = vmatmul.mubr.msk.f32.gmra.mrb[26].mxu0 %vm245_vm0, %v677_v13  ;;  %442 = vmatprep.mubr.f32.mxu1 %v1909_v7 }
  0x52   : > { %884 = vmatprep.mubr.f32.mxu0 %v1909_v7 }
  0x54   : > { %1472 = vmatmul.mubr.msk.f32.gmra.mrb[28].mxu1 %vm245_vm0, %v235_v14 }
  0x55   : > { %1504 = vmatmul.mubr.msk.f32.gmra.mrb[28].mxu0 %vm245_vm0, %v678_v15  ;;  %448 = vmatprep.mubr.f32.mxu1 %v1909_v7 }
  0x56   : > { %890 = vmatprep.mubr.f32.mxu0 %v1909_v7 }
  0x58   : > { %1473 = vmatmul.mubr.msk.f32.gmra.mrb[30].mxu1 %vm245_vm0, %v236_v16 }
  0x59   : > { %1505 = vmatmul.mubr.msk.f32.gmra.mrb[30].mxu0 %vm245_vm0, %v679_v17  ;;  %567 = vmatprep.mubr.f32.mxu1 %v1909_v7 }
  0x5a   : > { %1065 = vmatprep.mubr.f32.mxu0 %v1909_v7 }
  0x5c   : > { %1474 = vmatmul.mubr.msk.f32.vlgmr.msra.gmra.mrb[0].mxu1 %vm245_vm0, %v197_v18 }
  0x5d   : > { %1506 = vmatmul.mubr.msk.f32.vlgmr.msra.gmra.mrb[0].mxu0 %vm245_vm0, %v929_v19  ;;  %573 = vmatprep.mubr.f32.mxu1 %v1909_v7 }
  0x5e   : > { %1071 = vmatprep.mubr.f32.mxu0 %v1909_v7 }
  0x60   : > { %1475 = vmatmul.mubr.msk.f32.gmra.mrb[2].mxu1 %vm245_vm0, %v198_v20 }
  0x61   : > { %1507 = vmatmul.mubr.msk.f32.gmra.mrb[2].mxu0 %vm245_vm0, %v930_v21  ;;  %579 = vmatprep.mubr.f32.mxu1 %v1909_v7 }
  0x62   : > { %1077 = vmatprep.mubr.f32.mxu0 %v1909_v7 }
  0x64   : > { %1476 = vmatmul.mubr.msk.f32.gmra.mrb[4].mxu1 %vm245_vm0, %v199_v22 }
  0x65   : > { %1508 = vmatmul.mubr.msk.f32.gmra.mrb[4].mxu0 %vm245_vm0, %v931_v23  ;;  %585 = vmatprep.mubr.f32.mxu1 %v1909_v7 }
  0x66   : > { %1083 = vmatprep.mubr.f32.mxu0 %v1909_v7 }
  0x68   : > { %1477 = vmatmul.mubr.msk.f32.gmra.mrb[6].mxu1 %vm245_vm0, %v200_v24 }
  0x69   : > { %1509 = vmatmul.mubr.msk.f32.gmra.mrb[6].mxu0 %vm245_vm0, %v932_v25  ;;  %591 = vmatprep.mubr.f32.mxu1 %v1909_v7 }
  0x6a   : > { %1089 = vmatprep.mubr.f32.mxu0 %v1909_v7 }
  0x6c   : > { %1478 = vmatmul.mubr.msk.f32.gmra.mrb[8].mxu1 %vm245_vm0, %v201_v26 }
  0x6d   : > { %1510 = vmatmul.mubr.msk.f32.gmra.mrb[8].mxu0 %vm245_vm0, %v933_v27  ;;  %597 = vmatprep.mubr.f32.mxu1 %v1909_v7 }
  0x6e   : > { %1095 = vmatprep.mubr.f32.mxu0 %v1909_v7 }
  0x70   : > { %1479 = vmatmul.mubr.msk.f32.gmra.mrb[10].mxu1 %vm245_vm0, %v202_v28 }
  0x71   : > { %1511 = vmatmul.mubr.msk.f32.gmra.mrb[10].mxu0 %vm245_vm0, %v934_v29  ;;  %603 = vmatprep.mubr.f32.mxu1 %v1909_v7 }
  0x72   : > { %1101 = vmatprep.mubr.f32.mxu0 %v1909_v7 }
  0x74   : > { %1480 = vmatmul.mubr.msk.f32.gmra.mrb[12].mxu1 %vm245_vm0, %v203_v30 }
  0x75   : > { %1512 = vmatmul.mubr.msk.f32.gmra.mrb[12].mxu0 %vm245_vm0, %v935_v31  ;;  %609 = vmatprep.mubr.f32.mxu1 %v1909_v7 }
  0x76   : > { %1107 = vmatprep.mubr.f32.mxu0 %v1909_v7 }
  0x78   : > { %1481 = vmatmul.mubr.msk.f32.gmra.mrb[14].mxu1 %vm245_vm0, %v204_v32 }
  0x79   : > { %1513 = vmatmul.mubr.msk.f32.gmra.mrb[14].mxu0 %vm245_vm0, %v936_v33  ;;  %615 = vmatprep.mubr.f32.mxu1 %v1909_v7 }
  0x7a   : > { %1113 = vmatprep.mubr.f32.mxu0 %v1909_v7 }
  0x7c   : > { %1482 = vmatmul.mubr.msk.f32.gmra.mrb[16].mxu1 %vm245_vm0, %v205_v34 }
  0x7d   : > { %1514 = vmatmul.mubr.msk.f32.gmra.mrb[16].mxu0 %vm245_vm0, %v937_v35  ;;  %621 = vmatprep.mubr.f32.mxu1 %v1909_v7 }
  0x7e   : > { %1119 = vmatprep.mubr.f32.mxu0 %v1909_v7 }
  0x80   : > { %1483 = vmatmul.mubr.msk.f32.gmra.mrb[18].mxu1 %vm245_vm0, %v206_v36 }
  0x81   : > { %1515 = vmatmul.mubr.msk.f32.gmra.mrb[18].mxu0 %vm245_vm0, %v938_v37  ;;  %627 = vmatprep.mubr.f32.mxu1 %v1909_v7 }
  0x82   : > { %1125 = vmatprep.mubr.f32.mxu0 %v1909_v7 }
  0x84   : > { %1484 = vmatmul.mubr.msk.f32.gmra.mrb[20].mxu1 %vm245_vm0, %v207_v38 }
  0x85   : > { %1516 = vmatmul.mubr.msk.f32.gmra.mrb[20].mxu0 %vm245_vm0, %v939_v39  ;;  %633 = vmatprep.mubr.f32.mxu1 %v1909_v7 }
  0x86   : > { %1131 = vmatprep.mubr.f32.mxu0 %v1909_v7 }
  0x88   : > { %1485 = vmatmul.mubr.msk.f32.gmra.mrb[22].mxu1 %vm245_vm0, %v208_v40 }
  0x89   : > { %1517 = vmatmul.mubr.msk.f32.gmra.mrb[22].mxu0 %vm245_vm0, %v940_v41  ;;  %639 = vmatprep.mubr.f32.mxu1 %v1909_v7 }
  0x8a   : > { %1137 = vmatprep.mubr.f32.mxu0 %v1909_v7 }
  0x8c   : > { %1486 = vmatmul.mubr.msk.f32.gmra.mrb[24].mxu1 %vm245_vm0, %v209_v42 }
  0x8d   : > { %1518 = vmatmul.mubr.msk.f32.gmra.mrb[24].mxu0 %vm245_vm0, %v941_v43  ;;  %645 = vmatprep.mubr.f32.mxu1 %v1909_v7 }
  0x8e   : > { %1143 = vmatprep.mubr.f32.mxu0 %v1909_v7 }
  0x90   : > { %1487 = vmatmul.mubr.msk.f32.gmra.mrb[26].mxu1 %vm245_vm0, %v210_v44 }
  0x91   : > { %1519 = vmatmul.mubr.msk.f32.gmra.mrb[26].mxu0 %vm245_vm0, %v942_v45  ;;  %651 = vmatprep.mubr.f32.mxu1 %v1909_v7 }
  0x92   : > { %1149 = vmatprep.mubr.f32.mxu0 %v1909_v7 }
  0x94   : > { %1488 = vmatmul.mubr.msk.f32.gmra.mrb[28].mxu1 %vm245_vm0, %v211_v46 }
  0x95   : > { %1520 = vmatmul.mubr.msk.f32.gmra.mrb[28].mxu0 %vm245_vm0, %v943_v47  ;;  %657 = vmatprep.mubr.f32.mxu1 %v1909_v7 }
  0x96   : > { %1155 = vmatprep.mubr.f32.mxu0 %v1909_v7 }
  0x98   : > { %1489 = vmatmul.mubr.msk.f32.gmra.mrb[30].mxu1 %vm245_vm0, %v212_v48 }
  0x99   : > { %1521 = vmatmul.mubr.msk.f32.gmra.mrb[30].mxu0 %vm245_vm0, %v944_v49  ;;  %1583 = vmatprep.mubr.f32.mxu1 %v1244_v51 }
  0x9a   : > { %1580 = vmatprep.mubr.f32.mxu0 %v1242_v50 }
 0x12f   : > { %v569_v52 = vpop.f32.mrb[0].mxu1 }
 0x130   : > { %v1067_v53 = vpop.f32.mrb[0].mxu0  ;;  %v571_v54 = vpop.f32.mrb[1].mxu1 }
 0x131   : > { %v1666_v55 = vadd.f32 %v1067_v53, %v569_v52  ;;  %v1069_v7 = vpop.f32.mrb[1].mxu0 }
 0x132   : > { %v1667_v56 = vadd.f32 %v1069_v7, %v571_v54 }
 0x133   : > { %v1194_v57 = vmul.f32 %v1666_v55, %v1666_v55  ;;  %v575_v58 = vpop.f32.mrb[2].mxu1 }
 0x134   : > { %v1210_v59 = vmul.f32 %v1667_v56, %v1667_v56  ;;  %v1073_v60 = vpop.f32.mrb[2].mxu0  ;;  %v577_v61 = vpop.f32.mrb[3].mxu1 }
 0x135   : > { %v1668_v62 = vadd.f32 %v1073_v60, %v575_v58  ;;  %v1075_v63 = vpop.f32.mrb[3].mxu0 }
 0x136   : > { %v1226_v0 = vadd.f32 %v1210_v59, %v1194_v57  ;;  %v1669_v1 = vadd.f32 %v1075_v63, %v577_v61 }
 0x137   : > { %v1195_v2 = vmul.f32 %v1668_v62, %v1668_v62  ;;  %v581_v3 = vpop.f32.mrb[4].mxu1 }
 0x138   : > { %v1211_v4 = vmul.f32 %v1669_v1, %v1669_v1  ;;  %v1079_v5 = vpop.f32.mrb[4].mxu0  ;;  %v583_v6 = vpop.f32.mrb[5].mxu1 }
 0x139   : > { %v1670_v8 = vadd.f32 %v1079_v5, %v581_v3  ;;  %v1081_v9 = vpop.f32.mrb[5].mxu0 }
 0x13a   : > { %v1227_v10 = vadd.f32 %v1211_v4, %v1195_v2  ;;  %v1671_v11 = vadd.f32 %v1081_v9, %v583_v6 }
 0x13b   : > { %v1196_v12 = vmul.f32 %v1670_v8, %v1670_v8  ;;  %v587_v13 = vpop.f32.mrb[6].mxu1 }
 0x13c   : > { %v1618_v14 = vpack.c.bf16 %v1227_v10, %v1226_v0  ;;  %v1212_v15 = vmul.f32 %v1671_v11, %v1671_v11  ;;  %v1085_v16 = vpop.f32.mrb[6].mxu0  ;;  %v589_v17 = vpop.f32.mrb[7].mxu1 }
 0x13d   : > { %v1672_v18 = vadd.f32 %v1085_v16, %v587_v13  ;;  %v1087_v19 = vpop.f32.mrb[7].mxu0 }
 0x13e   : > { %v1228_v20 = vadd.f32 %v1212_v15, %v1196_v12  ;;  %v1673_v21 = vadd.f32 %v1087_v19, %v589_v17  ;;  %1619 = vmatprep.subr.bf16.mxu0 %v1618_v14  ;;  %1650 = vmatprep.subr.bf16.mxu1 %v1618_v14 }
 0x13f   : > { %v1197_v22 = vmul.f32 %v1672_v18, %v1672_v18  ;;  %1621 = vmatpush3.bf16.xpose.msra.mxu0 %v1618_v14  ;;  %1658 = vmatpush3.bf16.xpose.msra.mxu1 %v1618_v14  ;;  %v593_v23 = vpop.f32.mrb[8].mxu1 }
 0x140   : > { %v1213_v24 = vmul.f32 %v1673_v21, %v1673_v21  ;;  %v1091_v25 = vpop.f32.mrb[8].mxu0  ;;  %v595_v26 = vpop.f32.mrb[9].mxu1 }
 0x141   : > { %v1674_v27 = vadd.f32 %v1091_v25, %v593_v23  ;;  %v1093_v28 = vpop.f32.mrb[9].mxu0 }
 0x142   : > { %v1229_v29 = vadd.f32 %v1213_v24, %v1197_v22  ;;  %v1675_v30 = vadd.f32 %v1093_v28, %v595_v26 }
 0x143   : > { %v1198_v31 = vmul.f32 %v1674_v27, %v1674_v27  ;;  %v599_v32 = vpop.f32.mrb[10].mxu1 }
 0x144   : > { %v1622_v33 = vpack.c.bf16 %v1229_v29, %v1228_v20  ;;  %v1214_v34 = vmul.f32 %v1675_v30, %v1675_v30  ;;  %v1097_v35 = vpop.f32.mrb[10].mxu0  ;;  %v601_v36 = vpop.f32.mrb[11].mxu1 }
 0x145   : > { %v1676_v37 = vadd.f32 %v1097_v35, %v599_v32  ;;  %v1099_v38 = vpop.f32.mrb[11].mxu0 }
 0x146   : > { %v1230_v39 = vadd.f32 %v1214_v34, %v1198_v31  ;;  %v1677_v40 = vadd.f32 %v1099_v38, %v601_v36  ;;  %1623 = vmatprep.subr.bf16.mxu0 %v1622_v33  ;;  %1651 = vmatprep.subr.bf16.mxu1 %v1622_v33 }
 0x147   : > { %v1199_v41 = vmul.f32 %v1676_v37, %v1676_v37  ;;  %1625 = vmatpush3.bf16.xpose.msra.mxu0 %v1622_v33  ;;  %1659 = vmatpush3.bf16.xpose.msra.mxu1 %v1622_v33  ;;  %v605_v42 = vpop.f32.mrb[12].mxu1 }
 0x148   : > { %v1215_v43 = vmul.f32 %v1677_v40, %v1677_v40  ;;  %v1103_v44 = vpop.f32.mrb[12].mxu0  ;;  %v607_v45 = vpop.f32.mrb[13].mxu1 }
 0x149   : > { %v1678_v46 = vadd.f32 %v1103_v44, %v605_v42  ;;  %v1105_v47 = vpop.f32.mrb[13].mxu0 }
 0x14a   : > { %v1231_v48 = vadd.f32 %v1215_v43, %v1199_v41  ;;  %v1679_v49 = vadd.f32 %v1105_v47, %v607_v45 }
 0x14b   : > { %v1200_v50 = vmul.f32 %v1678_v46, %v1678_v46  ;;  %v611_v51 = vpop.f32.mrb[14].mxu1 }
 0x14c   : > { %v1626_v52 = vpack.c.bf16 %v1231_v48, %v1230_v39  ;;  %v1216_v53 = vmul.f32 %v1679_v49, %v1679_v49  ;;  %v1109_v54 = vpop.f32.mrb[14].mxu0  ;;  %v613_v55 = vpop.f32.mrb[15].mxu1 }
 0x14d   : > { %v1680_v7 = vadd.f32 %v1109_v54, %v611_v51  ;;  %v1111_v56 = vpop.f32.mrb[15].mxu0 }
 0x14e   : > { %v1232_v57 = vadd.f32 %v1216_v53, %v1200_v50  ;;  %v1681_v58 = vadd.f32 %v1111_v56, %v613_v55  ;;  %1627 = vmatprep.subr.bf16.mxu0 %v1626_v52  ;;  %1652 = vmatprep.subr.bf16.mxu1 %v1626_v52 }
 0x14f   : > { %v1201_v59 = vmul.f32 %v1680_v7, %v1680_v7  ;;  %1629 = vmatpush3.bf16.xpose.msra.mxu0 %v1626_v52  ;;  %1660 = vmatpush3.bf16.xpose.msra.mxu1 %v1626_v52  ;;  %v617_v60 = vpop.f32.mrb[16].mxu1 }
 0x150   : > { %v1217_v61 = vmul.f32 %v1681_v58, %v1681_v58  ;;  %v1115_v62 = vpop.f32.mrb[16].mxu0  ;;  %v619_v63 = vpop.f32.mrb[17].mxu1 }
 0x151   : > { %v1682_v0 = vadd.f32 %v1115_v62, %v617_v60  ;;  %v1117_v1 = vpop.f32.mrb[17].mxu0 }
 0x152   : > { %v1233_v2 = vadd.f32 %v1217_v61, %v1201_v59  ;;  %v1683_v3 = vadd.f32 %v1117_v1, %v619_v63 }
 0x153   : > { %v1202_v4 = vmul.f32 %v1682_v0, %v1682_v0  ;;  %v623_v5 = vpop.f32.mrb[18].mxu1 }
 0x154   : > { %v1630_v6 = vpack.c.bf16 %v1233_v2, %v1232_v57  ;;  %v1218_v8 = vmul.f32 %v1683_v3, %v1683_v3  ;;  %v1121_v9 = vpop.f32.mrb[18].mxu0  ;;  %v625_v10 = vpop.f32.mrb[19].mxu1 }
 0x155   : > { %v1684_v11 = vadd.f32 %v1121_v9, %v623_v5  ;;  %v1123_v12 = vpop.f32.mrb[19].mxu0 }
 0x156   : > { %v1234_v13 = vadd.f32 %v1218_v8, %v1202_v4  ;;  %v1685_v14 = vadd.f32 %v1123_v12, %v625_v10  ;;  %1631 = vmatprep.subr.bf16.mxu0 %v1630_v6  ;;  %1653 = vmatprep.subr.bf16.mxu1 %v1630_v6  ;;  %v1243_v12 = vld [vmem:[%s2352_s2 + $0x8] sm:$0xff] }
 0x157   : > { %v1203_v15 = vmul.f32 %v1684_v11, %v1684_v11  ;;  %1633 = vmatpush3.bf16.xpose.msra.mxu0 %v1630_v6  ;;  %1661 = vmatpush3.bf16.xpose.msra.mxu1 %v1630_v6  ;;  %v629_v16 = vpop.f32.mrb[20].mxu1 }
 0x158   : > { %v1219_v17 = vmul.f32 %v1685_v14, %v1685_v14  ;;  %v1127_v18 = vpop.f32.mrb[20].mxu0  ;;  %v631_v19 = vpop.f32.mrb[21].mxu1 }
 0x159   : > { %v1686_v20 = vadd.f32 %v1127_v18, %v629_v16  ;;  %v1129_v21 = vpop.f32.mrb[21].mxu0 }
 0x15a   : > { %v1235_v22 = vadd.f32 %v1219_v17, %v1203_v15  ;;  %v1687_v23 = vadd.f32 %v1129_v21, %v631_v19 }
 0x15b   : > { %v1204_v24 = vmul.f32 %v1686_v20, %v1686_v20  ;;  %v635_v25 = vpop.f32.mrb[22].mxu1 }
 0x15c   : > { %v1634_v26 = vpack.c.bf16 %v1235_v22, %v1234_v13  ;;  %v1220_v27 = vmul.f32 %v1687_v23, %v1687_v23  ;;  %v1133_v28 = vpop.f32.mrb[22].mxu0  ;;  %v637_v29 = vpop.f32.mrb[23].mxu1  ;;  %v1245_v13 = vld [vmem:[%s2352_s2 + $0x18] sm:$0xff] }
 0x15d   : > { %v1688_v30 = vadd.f32 %v1133_v28, %v635_v25  ;;  %v1135_v31 = vpop.f32.mrb[23].mxu0 }
 0x15e   : > { %v1236_v32 = vadd.f32 %v1220_v27, %v1204_v24  ;;  %v1689_v33 = vadd.f32 %v1135_v31, %v637_v29  ;;  %1635 = vmatprep.subr.bf16.mxu0 %v1634_v26  ;;  %1654 = vmatprep.subr.bf16.mxu1 %v1634_v26 }
 0x15f   : > { %v1205_v34 = vmul.f32 %v1688_v30, %v1688_v30  ;;  %1637 = vmatpush3.bf16.xpose.msra.mxu0 %v1634_v26  ;;  %1662 = vmatpush3.bf16.xpose.msra.mxu1 %v1634_v26  ;;  %v641_v35 = vpop.f32.mrb[24].mxu1 }
 0x160   : > { %v1221_v36 = vmul.f32 %v1689_v33, %v1689_v33  ;;  %v1139_v37 = vpop.f32.mrb[24].mxu0  ;;  %v643_v38 = vpop.f32.mrb[25].mxu1 }
 0x161   : > { %v1690_v39 = vadd.f32 %v1139_v37, %v641_v35  ;;  %v1141_v40 = vpop.f32.mrb[25].mxu0 }
 0x162   : > { %v1237_v41 = vadd.f32 %v1221_v36, %v1205_v34  ;;  %v1691_v42 = vadd.f32 %v1141_v40, %v643_v38 }
 0x163   : > { %v1206_v43 = vmul.f32 %v1690_v39, %v1690_v39  ;;  %v647_v44 = vpop.f32.mrb[26].mxu1 }
 0x164   : > { %v1638_v45 = vpack.c.bf16 %v1237_v41, %v1236_v32  ;;  %v1222_v46 = vmul.f32 %v1691_v42, %v1691_v42  ;;  %v1145_v47 = vpop.f32.mrb[26].mxu0  ;;  %v649_v48 = vpop.f32.mrb[27].mxu1 }
 0x165   : > { %v1692_v49 = vadd.f32 %v1145_v47, %v647_v44  ;;  %v1147_v50 = vpop.f32.mrb[27].mxu0 }
 0x166   : > { %v1238_v51 = vadd.f32 %v1222_v46, %v1206_v43  ;;  %v1693_v52 = vadd.f32 %v1147_v50, %v649_v48  ;;  %1639 = vmatprep.subr.bf16.mxu0 %v1638_v45  ;;  %1655 = vmatprep.subr.bf16.mxu1 %v1638_v45 }
 0x167   : > { %v1207_v53 = vmul.f32 %v1692_v49, %v1692_v49  ;;  %1641 = vmatpush3.bf16.xpose.msra.mxu0 %v1638_v45  ;;  %1663 = vmatpush3.bf16.xpose.msra.mxu1 %v1638_v45  ;;  %v653_v54 = vpop.f32.mrb[28].mxu1 }
 0x168   : > { %v1223_v55 = vmul.f32 %v1693_v52, %v1693_v52  ;;  %v1151_v7 = vpop.f32.mrb[28].mxu0  ;;  %v655_v56 = vpop.f32.mrb[29].mxu1 }
 0x169   : > { %v1694_v57 = vadd.f32 %v1151_v7, %v653_v54  ;;  %v1153_v58 = vpop.f32.mrb[29].mxu0 }
 0x16a   : > { %v1239_v59 = vadd.f32 %v1223_v55, %v1207_v53  ;;  %v1695_v60 = vadd.f32 %v1153_v58, %v655_v56 }
 0x16b   : > { %v1208_v61 = vmul.f32 %v1694_v57, %v1694_v57  ;;  %v659_v62 = vpop.f32.mrb[30].mxu1 }
 0x16c   : > { %v1642_v63 = vpack.c.bf16 %v1239_v59, %v1238_v51  ;;  %v1224_v0 = vmul.f32 %v1695_v60, %v1695_v60  ;;  %v1157_v1 = vpop.f32.mrb[30].mxu0  ;;  %v661_v2 = vpop.f32.mrb[31].mxu1 }
 0x16d   : > { %v1696_v3 = vadd.f32 %v1157_v1, %v659_v62  ;;  %v1159_v4 = vpop.f32.mrb[31].mxu0 }
 0x16e   : > { %v1240_v5 = vadd.f32 %v1224_v0, %v1208_v61  ;;  %v1697_v6 = vadd.f32 %v1159_v4, %v661_v2  ;;  %1643 = vmatprep.subr.bf16.mxu0 %v1642_v63  ;;  %1656 = vmatprep.subr.bf16.mxu1 %v1642_v63 }
 0x16f   : > { %v1209_v8 = vmul.f32 %v1696_v3, %v1696_v3  ;;  %1645 = vmatpush3.bf16.xpose.msra.mxu0 %v1642_v63  ;;  %1664 = vmatpush3.bf16.xpose.msra.mxu1 %v1642_v63 }
 0x170   : > { %v1225_v9 = vmul.f32 %v1697_v6, %v1697_v6 }
 0x172   : > { %v1241_v10 = vadd.f32 %v1225_v9, %v1209_v8 }
 0x174   : > { %v1646_v11 = vpack.c.bf16 %v1241_v10, %v1240_v5 }
 0x176   : > { %1647 = vmatprep.subr.bf16.mxu0 %v1646_v11  ;;  %1657 = vmatprep.subr.bf16.mxu1 %v1646_v11 }
 0x177   : > { %1649 = vmatpush3.bf16.xpose.msra.mxu0 %v1646_v11  ;;  %1665 = vmatpush3.bf16.xpose.msra.mxu1 %v1646_v11 }
 0x17e   : > { %1581 = vmatmul.mubr.f32.vlgmr.msra.gmra.mrb[32].mxu0 %v1243_v12  ;;  %1584 = vmatmul.mubr.f32.vlgmr.msra.gmra.mrb[32].mxu1 %v1245_v13 }
 0x251   : > { %v1582_v14 = vpop.f32.mrb[32].mxu0  ;;  %v1585_v15 = vpop.f32.mrb[32].mxu1 }
 0x252   : > { %v1332_v16 = vmax.f32 %v1582_v14, 1e-16  ;;  %v1334_v17 = vmax.f32 %v1585_v15, 1e-16  ;;  %v1312_v18 = vpop.f32.mrb[33].mxu0  ;;  %v1322_v19 = vpop.f32.mrb[33].mxu1 }
 0x253   : > { %v1331_v20 = vmax.f32 %v1312_v18, 1e-16  ;;  %v1333_v21 = vmax.f32 %v1322_v19, 1e-16 }
 0x254   : > { %1821 = vlog2.f32 %v1332_v16 }
 0x255   : > { %1823 = vlog2.f32 %v1334_v17 }
 0x256   : > { %1825 = vlog2.f32 %v1331_v20 }
 0x257   : > { %1827 = vlog2.f32 %v1333_v21 }
 0x25e   : > { %v1822_v22 = vpop.eup %1821 }
 0x25f   : > { %v1824_v23 = vpop.eup %1823  ;;  %v1338_v24 = vmul.f32 0.6931472, %v1822_v22 }
 0x260   : > { %v1826_v25 = vpop.eup %1825  ;;  %v1342_v26 = vmul.f32 0.6931472, %v1824_v23 }
 0x261   : > { %v1828_v27 = vpop.eup %1827  ;;  %v1344_v28 = vmul.f32 0.4342945, %v1338_v24  ;;  %v1336_v29 = vmul.f32 0.6931472, %v1826_v25 }
 0x262   : > { %v1346_v30 = vmul.f32 0.4342945, %v1342_v26  ;;  %v1340_v31 = vmul.f32 0.6931472, %v1828_v27 }
 0x263   : > { %v1348_v32 = vmul.f32 10.0, %v1344_v28  ;;  %v1343_v33 = vmul.f32 0.4342945, %v1336_v29 }
 0x264   : > { %v1350_v34 = vmul.f32 10.0, %v1346_v30  ;;  %v1345_v35 = vmul.f32 0.4342945, %v1340_v31 }
 0x265   : > { %1352 = vst [vmem:[%s187_s11 + $0x8] sm:$0xff] %v1348_v32  ;;  %v1347_v36 = vmul.f32 10.0, %v1343_v33 }
 0x266   : > { %1354 = vst [vmem:[%s187_s11 + $0x18] sm:$0xff] %v1350_v34  ;;  %v1349_v37 = vmul.f32 10.0, %v1345_v35 }
 0x267   : > { %1351 = vst [vmem:[%s187_s11] sm:$0xff] %v1347_v36 }
 0x268   : > { %1353 = vst [vmem:[%s187_s11 + $0x10] sm:$0xff] %v1349_v37 }
 0x269   : > { %1842 = shalt.err (!%p1839_p5)
}
 0x26a   : > { %s1843_s5 = scalar_lea.hbm %s2302_s26, 512  ;;  %s1847_s7 = scalar_lea.hbm %s2353_s3, 1024 }
 0x26b   : > { %p1844_p6 = scmp.ne.s32.totalorder %s2302_s26, %s1843_s5  ;;  %p1848_p10 = scmp.lt.u32.totalorder %s2302_s26, %s2353_s3 }
 0x26c   : > { %p1849_p11 = scmp.lt.u32.totalorder %s1847_s7, %s1843_s5  ;;  %p1851_p13 = scmp.lt.u32.totalorder %s1843_s5, %s2302_s26 }
 0x26d   : > { %p1845_p7 = pnand %p1844_p6, %p1973_p4 }
 0x26e   : > { %p1850_p12 = por %p1849_p11, %p1848_p10 }
 0x26f   : > { %p1846_p9 = pneg %p1845_p7 }
 0x270   : > { %p1852_p0 = por %p1851_p13, %p1850_p12 }
 0x272   : > { %p1853_p1 = pnand %p1852_p0, %p1846_p9 }
 0x274   : > { %1856 = shalt.err (!%p1853_p1)
}
 0x275   : > { %s1911_s10 = smov 128   ;;  %s1912_s11 = smov 8  }
 0x276   : > { %1763 = dma.vmem_to_hbm [thread:$0]  (%p1973_p4), %s2297_s18, 512, %s2302_s26, %s2304_s15, %s1911_s10, %s1911_s10, %s1912_s11  }
 0x277 PF: > { %p1769_p2 = scmp.ge.s32.totalorder %s1907_s17, 2  ;;  %s1385_s21 = sand.u32 1, %s1887_s12  }
 0x278   : > { %s1386_s19 = scalar_lea.sflag [#allocation3], %s1385_s21 }
 0x279   : > { %p1766_p3 = pnand %p1769_p2, %p1980_p8 }
 0x27b   : > { %1882 = dma.done.wait (!%p1766_p3), %s1386_s19, 512  }
 0x27c   : > { %1884 = vsyncadd (!%p1766_p3), %s1386_s19, 4294966784  ;;  %s16_s17 = sadd.s32 1, %s1907_s17   ;;  %s2356_s12 = smov %s1891_s13 }
 0x27d   : > { %p13_p5 = scmp.ge.s32.totalorder %s16_s17, 4   ;;  %s2357_s13 = smov %s1895_s14 }
 0x27e   : > { %s2358_s14 = smov %s1986_s25  ;;  %s2359_s15 = smov %s1903_s16 }
 0x27f   : > { %s2360_s16 = smov %s2362_s20  ;;  %15 = sbr.rel (!%p13_p5) target bundleno = 4 (0x4), region = 67 }
 0x286   :  { %1391 = vsyncpa [#allocation3], 1 }
 0x287   :  { %1393 = vsyncpa [#allocation3 + $0x1], 1 }

</bundles_post_ra>
